<compile_context>
chip_gen: v7x
topology: tpu7x:2x2x1
jax: 0.10.0
libtpu: 0.0.40
codegen_flags: <defaults>
</compile_context>

<pallas_src>
import functools
import math

import jax
import jax.numpy as jnp
import numpy as np
from jax.experimental import pallas as pl
from jax.experimental.pallas import tpu as pltpu

LRELU_SLOPE = 0.1
_T_TILE_MAX = 8192


def _round_up(x, m):
    return (x + m - 1) // m * m


def _largest_divisor_leq(n, bound):
    bound = max(1, min(n, int(bound)))
    for d in range(bound, 0, -1):
        if n % d == 0:
            return d
    return 1


def _tpu_vmem_capacity_bytes():
    """Per-core VMEM capacity; conservative (v7x) fallback if the query fails."""
    try:
        info = pltpu.get_tpu_info()
        cap = getattr(info, "vmem_capacity_bytes", None)
        if cap:
            return int(cap)
    except Exception:
        pass
    return 64 * 1024 * 1024


_VMEM_CAP = _tpu_vmem_capacity_bytes()
_BIG_VMEM = _VMEM_CAP >= 100 * 1024 * 1024              # v5e/v6e: 128 MiB; v7x: 64 MiB
_VMEM_LIMIT = (96 if _BIG_VMEM else 48) * 1024 * 1024
_X_BLOCK_TARGET = (8 if _BIG_VMEM else 6) * 1024 * 1024  # target bytes per x block
_MAX_COB = 1024 if _BIG_VMEM else 512                    # output-channel tile cap (G==1)


def _gconv_kernel(x_ref, w_ref, b_ref, o_ref, *, apply_lrelu, slope):
    """One (batch, group-block, cout-block, time-tile) tile of a grouped Conv1d.

    x_ref: (1, GB, R, Tt)   im2col'd activations, R = cin_g*K, time on lanes
    w_ref: (GB, R, COB)     per-group weights
    b_ref: (GB, COB, 1)     bias (f32)
    o_ref: (1, GB*COB, Tt)  output tile (torch grouped-conv channel order, NCW)
    """
    x = x_ref[0]                      # (GB, R, Tt)
    w = w_ref[...]                    # (GB, R, COB)
    # Batched MXU matmul: acc[g, c, t] = sum_r w[g, r, c] * x[g, r, t]
    acc = jax.lax.dot_general(
        w, x,
        dimension_numbers=(((1,), (1,)), ((0,), (0,))),
        preferred_element_type=jnp.float32)            # (GB, COB, Tt) f32
    acc = acc + b_ref[...]                             # broadcast over Tt
    if apply_lrelu:
        acc = jnp.where(acc >= 0.0, acc, acc * slope)
    gb, cob, tt = acc.shape
    acc = acc.astype(o_ref.dtype)
    pack = 16 if acc.dtype.itemsize == 2 else 8        # sublane packing of out dtype
    if gb == 1 or cob % pack == 0:
        # (GB, COB) channel merge is tile-aligned -> single dense store.
        o_ref[...] = acc.reshape(1, gb * cob, tt)
    else:
        # Fallback (not reached for DiscriminatorS configs thanks to group packing).
        for g in range(gb):
            o_ref[0, g * cob:(g + 1) * cob, :] = acc[g]


def _pack_small_groups(w, groups, pack):
    """Merge m adjacent groups (block-diagonal weights) so per-group cout is a multiple
    of the sublane pack.  The grouped-conv result and channel order are unchanged
    (added terms are exact zeros); only the (tiny) weights grow m-fold."""
    c_out, cin_g, K = w.shape
    cout_g = c_out // groups
    if groups == 1 or cout_g >= pack or pack % cout_g != 0:
        return w, groups
    m = pack // cout_g
    if groups % m != 0:
        return w, groups
    g_new = groups // m
    w4 = w.reshape(g_new, m, cout_g, cin_g, K)
    eye = jnp.eye(m, dtype=w.dtype)
    # w_bd[g, i, c, j, n, k] = w4[g, i, c, n, k] * (i == j)
    w_bd = jnp.einsum("gicnk,ij->gicjnk", w4, eye).reshape(c_out, m * cin_g, K)
    return w_bd, g_new


def conv1d_grouped(x_nct, w, b, *, stride, padding, groups, apply_lrelu,
                   slope=LRELU_SLOPE, compute_dtype=jnp.bfloat16, out_dtype=None):
    """Grouped 1-D conv with PyTorch Conv1d semantics (+ optional leaky-relu), via Pallas.

    x_nct: (B, C_in, T).  Returns (B, C_out, T_out) in `out_dtype` (NCW, as torch).
    """
    if out_dtype is None:
        out_dtype = compute_dtype
    B, c_in, T = x_nct.shape

    # Sublane-pack-align small per-group cout (layer with cout_g=4) via block-diag merge.
    sub_pack = 16 if np.dtype(out_dtype).itemsize == 2 else 8
    w, groups = _pack_small_groups(w, groups, sub_pack)

    c_out, cin_g, K = w.shape
    G = groups
    assert c_in == cin_g * G and c_out % G == 0
    cout_g = c_out // G
    R = cin_g * K
    t_out = (T + 2 * padding - K) // stride + 1
    itemsize = np.dtype(compute_dtype).itemsize

    # ---- tiling ----------------------------------------------------------------
    # output-channel tile (only G==1 layers have large cout_g; cap it per-generation)
    if G == 1 and cout_g > _MAX_COB and cout_g % _MAX_COB == 0:
        cob = _MAX_COB
    else:
        cob = cout_g
    # groups fused per grid step, capped so a minimum-size x block stays in budget
    gb = _largest_divisor_leq(
        G, min(32, max(1, _X_BLOCK_TARGET // (R * itemsize * 256))))
    # time tile = lane dim of every block: multiple of 256, sized so x block ~ target
    t_cap = max(256, min(_T_TILE_MAX,
                         (_X_BLOCK_TARGET // (gb * R * itemsize)) // 256 * 256))
    t_tile = min(t_cap, _round_up(t_out, 256))
    t_out_p = _round_up(t_out, t_tile)
    ch_blk = gb * cob                                   # output channels per block
    n_gb, n_cb, n_tb = G // gb, cout_g // cob, t_out_p // t_tile

    # ---- glue (XLA): pad, group split, strided-slice im2col, weight repack ------
    t_in_needed = (t_out_p - 1) * stride + K
    pad_r = padding + max(0, t_in_needed - (T + 2 * padding))
    x_p = jnp.pad(x_nct.astype(compute_dtype), ((0, 0), (0, 0), (padding, pad_r)))
    x_g = x_p.reshape(B, G, cin_g, -1)
    span = (t_out_p - 1) * stride + 1
    # K strided slices (cheap copies) instead of an advanced-index gather HLO.
    taps = [x_g[:, :, :, k:k + span:stride] for k in range(K)]   # each (B,G,cin_g,Tp)
    x_col = jnp.stack(taps, axis=3).reshape(B, G, R, t_out_p)    # r = ci*K + k
    w_col = (w.reshape(G, cout_g, cin_g, K).transpose(0, 2, 3, 1)
              .reshape(G, R, cout_g).astype(compute_dtype))      # (G, R, cout_g)
    b_col = b.reshape(G, cout_g, 1).astype(jnp.float32)

    # ---- index maps (grid = (group_blk, cout_blk, batch, time_tile)) ------------
    def _x_map(gi, ci, bi, ti):
        return (bi, gi, 0, ti)

    def _w_map(gi, ci, bi, ti):
        return (gi, 0, ci)

    def _b_map(gi, ci, bi, ti):
        return (gi, ci, 0)

    def _o_map(gi, ci, bi, ti):
        return (bi, gi * n_cb + ci, ti)

    kernel = functools.partial(_gconv_kernel, apply_lrelu=apply_lrelu, slope=slope)
    out = pl.pallas_call(
        kernel,
        out_shape=jax.ShapeDtypeStruct((B, c_out, t_out_p), out_dtype),
        # batch & time innermost -> weight block index constant, its DMA is skipped
        grid=(n_gb, n_cb, B, n_tb),
        in_specs=[
            pl.BlockSpec((1, gb, R, t_tile), _x_map),
            pl.BlockSpec((gb, R, cob), _w_map),
            pl.BlockSpec((gb, cob, 1), _b_map),
        ],
        out_specs=pl.BlockSpec((1, ch_blk, t_tile), _o_map),
        compiler_params=pltpu.CompilerParams(
            dimension_semantics=("parallel", "parallel", "parallel", "parallel"),
            vmem_limit_bytes=_VMEM_LIMIT,
        ),
    )(x_col, w_col, b_col)

    # already NCW (torch grouped channel order); drop the time-tile padding
    return out[:, :, :t_out]


# (c_in, c_out, kernel, stride, groups, padding) — last entry is conv_post
_CONV_CFGS = [
    (1, 16, 15, 1, 1, 7),
    (16, 64, 41, 4, 4, 20),
    (64, 256, 41, 4, 16, 20),
    (256, 1024, 41, 4, 64, 20),
    (1024, 1024, 41, 4, 256, 20),
    (1024, 1024, 5, 1, 1, 2),
    (1024, 1, 3, 1, 1, 1),
]


def init_discriminator_s_params(key):
    params = []
    keys = jax.random.split(key, len(_CONV_CFGS))
    for k, (cin, cout, ksz, stride, groups, pad) in zip(keys, _CONV_CFGS):
        wk, bk = jax.random.split(k)
        fan_in = (cin // groups) * ksz
        bound = 1.0 / math.sqrt(fan_in)
        w = jax.random.uniform(wk, (cout, cin // groups, ksz), jnp.float32, -bound, bound)
        b = jax.random.uniform(bk, (cout,), jnp.float32, -bound, bound)
        params.append(dict(w=w, b=b, stride=stride, groups=groups, padding=pad))
    return params


def discriminator_s_forward(x, params, compute_dtype=jnp.bfloat16):
    """x: (B, 1, T) NCW.  Returns (flattened logits (B, T_post), fmap list in NCW).

    Intermediate activations / fmaps are stored in `compute_dtype` (bf16 on the fast
    path) to halve inter-layer HBM traffic; the final logits are f32.
    """
    fmap = []
    for p in params[:-1]:
        x = conv1d_grouped(x, p["w"], p["b"], stride=p["stride"], padding=p["padding"],
                           groups=p["groups"], apply_lrelu=True,
                           compute_dtype=compute_dtype, out_dtype=compute_dtype)
        fmap.append(x)
    p = params[-1]
    x = conv1d_grouped(x, p["w"], p["b"], stride=p["stride"], padding=p["padding"],
                       groups=p["groups"], apply_lrelu=False,
                       compute_dtype=compute_dtype, out_dtype=jnp.float32)
    fmap.append(x)
    return x.reshape(x.shape[0], -1), fmap


def _ref_forward(x, params):
    """Pure-JAX f32 reference (XLA conv) for correctness checking."""
    def conv(x, p):
        y = jax.lax.conv_general_dilated(
            x, p["w"], window_strides=(p["stride"],),
            padding=[(p["padding"], p["padding"])],
            dimension_numbers=("NCH", "OIH", "NCH"),
            feature_group_count=p["groups"])
        return y + p["b"][None, :, None]
    fmap = []
    for p in params[:-1]:
        x = conv(x, p)
        x = jnp.where(x >= 0.0, x, x * LRELU_SLOPE)
        fmap.append(x)
    x = conv(x, params[-1])
    fmap.append(x)
    return x.reshape(x.shape[0], -1), fmap


def _to_f32(a):
    return np.asarray(a).astype(np.float32)


if __name__ == "__main__":
    key = jax.random.PRNGKey(0)
    pkey, xkey = jax.random.split(key)
    params = init_discriminator_s_params(pkey)

    B, T = 2, 64
    x = jax.random.normal(xkey, (B, 1, T), dtype=jnp.float32)

    ref_out, ref_fmap = _ref_forward(x, params)

    # Strict semantic check: f32 compute path vs XLA f32 conv reference.
    out32, fmap32 = discriminator_s_forward(x, params, compute_dtype=jnp.float32)
    out32 = jax.block_until_ready(out32)
    fmap32 = [jax.block_until_ready(f) for f in fmap32]
    np.testing.assert_allclose(_to_f32(out32), _to_f32(ref_out), rtol=2e-3, atol=2e-4)
    for a, r in zip(fmap32, ref_fmap):
        np.testing.assert_allclose(_to_f32(a), _to_f32(r), rtol=2e-3, atol=2e-4)

    # Fast path (default): bf16 MXU inputs + bf16 intermediates, f32 accumulation.
    out_bf, fmap_bf = discriminator_s_forward(x, params)
    out_bf = jax.block_until_ready(out_bf)
    fmap_bf = [jax.block_until_ready(f) for f in fmap_bf]
    np.testing.assert_allclose(_to_f32(out_bf), _to_f32(ref_out), rtol=5e-2, atol=5e-2)
    for a, r in zip(fmap_bf, ref_fmap):
        np.testing.assert_allclose(_to_f32(a), _to_f32(r), rtol=5e-2, atol=5e-2)

    print("KERNEL_OK")
</pallas_src>

<mosaic_0001>
module attributes {stable_mosaic.version = 11 : i64} {
  func.func @_gconv_kernel(%arg0: i32, %arg1: i32, %arg2: i32, %arg3: i32, %arg4: memref<1x1x15x256xf32, #tpu.memory_space<vmem>>, %arg5: memref<1x15x16xf32, #tpu.memory_space<vmem>>, %arg6: memref<1x16x1xf32, #tpu.memory_space<vmem>>, %arg7: memref<1x16x256xf32, #tpu.memory_space<vmem>>) attributes {dimension_semantics = [#tpu.dimension_semantics<parallel>, #tpu.dimension_semantics<parallel>, #tpu.dimension_semantics<parallel>, #tpu.dimension_semantics<parallel>], iteration_bounds = array<i64: 1, 1, 2, 1>, scalar_prefetch = 0 : i64, scratch_operands = 0 : i64, tpu.core_type = #tpu.core_type<tc>, window_params = [{transform_indices = @transform_0, window_bounds = array<i64: 1, 1, 15, 256>}, {transform_indices = @transform_1, window_bounds = array<i64: 1, 15, 16>}, {transform_indices = @transform_2, window_bounds = array<i64: 1, 16, 1>}, {transform_indices = @transform_3, window_bounds = array<i64: 1, 16, 256>}]} {
    %c0 = arith.constant 0 : index
    %c0_0 = arith.constant 0 : index
    %c0_1 = arith.constant 0 : index
    %c0_2 = arith.constant 0 : index
    %0 = vector.load %arg4[%c0, %c0_0, %c0_1, %c0_2] : memref<1x1x15x256xf32, #tpu.memory_space<vmem>>, vector<1x1x15x256xf32>
    %1 = vector.shape_cast %0 : vector<1x1x15x256xf32> to vector<1x15x256xf32>
    %c0_3 = arith.constant 0 : index
    %c0_4 = arith.constant 0 : index
    %c0_5 = arith.constant 0 : index
    %2 = vector.load %arg5[%c0_3, %c0_4, %c0_5] : memref<1x15x16xf32, #tpu.memory_space<vmem>>, vector<1x15x16xf32>
    %cst = arith.constant dense<0.000000e+00> : vector<1x16x256xf32>
    %3 = tpu.matmul %2, %1, %cst {dimension_numbers = #tpu.dot_dimension_numbers<[1], [1], [2], [2], [0, 0, 0, 2, 1, 2], [0], [0]>} : vector<1x15x16xf32>, vector<1x15x256xf32>, vector<1x16x256xf32> -> vector<1x16x256xf32>
    %c0_6 = arith.constant 0 : index
    %c0_7 = arith.constant 0 : index
    %c0_8 = arith.constant 0 : index
    %4 = vector.load %arg6[%c0_6, %c0_7, %c0_8] : memref<1x16x1xf32, #tpu.memory_space<vmem>>, vector<1x16x1xf32>
    %5 = vector.broadcast %4 : vector<1x16x1xf32> to vector<1x16x256xf32>
    %6 = arith.addf %3, %5 : vector<1x16x256xf32>
    %cst_9 = arith.constant 0.000000e+00 : f32
    %7 = vector.broadcast %cst_9 : f32 to vector<1x16x256xf32>
    %8 = arith.cmpf oge, %6, %7 : vector<1x16x256xf32>
    %cst_10 = arith.constant 1.000000e-01 : f32
    %9 = vector.broadcast %cst_10 : f32 to vector<1x16x256xf32>
    %10 = arith.mulf %6, %9 : vector<1x16x256xf32>
    %11 = arith.select %8, %6, %10 : vector<1x16x256xi1>, vector<1x16x256xf32>
    %c0_11 = arith.constant 0 : index
    %c0_12 = arith.constant 0 : index
    %c0_13 = arith.constant 0 : index
    %12 = vector.load %arg7[%c0_11, %c0_12, %c0_13] : memref<1x16x256xf32, #tpu.memory_space<vmem>>, vector<1x16x256xf32>
    tpu.vector_store %arg7[%c0_11, %c0_12, %c0_13], %11 {strides = array<i32>} : memref<1x16x256xf32, #tpu.memory_space<vmem>>, vector<1x16x256xf32>,
    return
  }
  func.func @transform_0(%arg0: i32, %arg1: i32, %arg2: i32, %arg3: i32) -> (i32, i32, i32, i32) {
    %c0_i32 = arith.constant 0 : i32
    %c0_i32_0 = arith.constant 0 : i32
    return %arg2, %arg0, %c0_i32, %arg3 : i32, i32, i32, i32
  }
  func.func @transform_1(%arg0: i32, %arg1: i32, %arg2: i32, %arg3: i32) -> (i32, i32, i32) {
    %c0_i32 = arith.constant 0 : i32
    %c0_i32_0 = arith.constant 0 : i32
    return %arg0, %c0_i32, %arg1 : i32, i32, i32
  }
  func.func @transform_2(%arg0: i32, %arg1: i32, %arg2: i32, %arg3: i32) -> (i32, i32, i32) {
    %c0_i32 = arith.constant 0 : i32
    %c0_i32_0 = arith.constant 0 : i32
    return %arg0, %arg1, %c0_i32 : i32, i32, i32
  }
  func.func @transform_3(%arg0: i32, %arg1: i32, %arg2: i32, %arg3: i32) -> (i32, i32, i32) {
    %c1_i32 = arith.constant 1 : i32
    %0 = arith.muli %arg0, %c1_i32 : i32
    %1 = arith.addi %0, %arg1 : i32
    %c0_i32 = arith.constant 0 : i32
    return %arg2, %1, %arg3 : i32, i32, i32
  }
}

</mosaic_0001>

<bundles_post_ra>
// kernel: tpu_custom_call.1
= control target key start
LH: loop header
LB: loop body
LE: loop exit
PB: predicated region body
PF: predicated region fallthrough
CT: control target
= control target key end

     0   :  { %8 = vsyncpa [#allocation3], 0  ;;  %s942_s0 = inlined_call_operand.vmem [shape: f32[2,1,15,256], index: 0, kind: input, shape index: {}]   ;;  %s943_s1 = inlined_call_operand.vmem [shape: f32[1,15,16], index: 1, kind: input, shape index: {}]   ;;  %s944_s2 = inlined_call_operand.vmem [shape: f32[1,16,1], index: 2, kind: input, shape index: {}]   ;;  %s945_s3 = inlined_call_operand.hbm [shape: f32[2,16,256], index: 3, kind: output, shape index: {}]  }
   0x1   :  { %10 = vsyncpa [#allocation3 + $0x1], 0  ;;  %s811_s12 = smov 0   ;;  %s813_s13 = smov 0  }
   0x2   :  { %s815_s14 = smov 0   ;;  %s817_s15 = smov 0  }
   0x3   :  { %s819_s16 = smov 0   ;;  %s821_s17 = smov 0  }
   0x4 LB: > { %s614_s18 = sadd.s32 4294967295, %s783_s17   ;;  %s615_s19 = sadd.s32 4294967294, %s783_s17   ;;  %s783_s17 = sphi %s821_s17, %s16_s17   ;;  %s779_s16 = sphi %s819_s16, %s952_s16   ;;  %s775_s15 = sphi %s817_s15, %s951_s15   ;;  %s771_s14 = sphi %s815_s14, %s950_s14   ;;  %s767_s13 = sphi %s813_s13, %s949_s13   ;;  %s763_s12 = sphi %s811_s12, %s948_s12  }
   0x5   : > { %s34_s20 = sadd.s32 1, %s779_s16  ;;  %s141_s21 = sadd.s32 1, %s771_s14 }
   0x6   : > { %p36_p0 = scmp.ge.s32.totalorder %s34_s20, 2  ;;  %p151_p1 = scmp.ne.s32.totalorder %s771_s14, %s767_s13 }
   0x7   : > { %p152_p2 = scmp.eq.s32.totalorder %s614_s18, 1  ;;  %p157_p3 = scmp.ne.s32.totalorder %s767_s13, %s763_s12 }
   0x8   : > { %s954_s20 = smov (%p36_p0, %s34_s20), 0  ;;  %p158_p5 = scmp.eq.s32.totalorder %s615_s19, 1 }
   0x9   : > { %p851_p4 = por %p152_p2, %p151_p1  ;;  %s134_s23 = ssub.s32 %s779_s16, %s954_s20 }
   0xa   : > { %p620_p6 = scmp.ge.s32.totalorder %s783_s17, 1  ;;  %p139_p7 = scmp.eq.s32.totalorder %s134_s23, 0 }
   0xb   : > { %p858_p8 = por %p158_p5, %p157_p3  ;;  %p217_p9 = scmp.lt.s32.totalorder %s783_s17, 3 }
   0xc   : > { %s864_s25 = scalar_select %p139_p7, %s771_s14, %s141_s21  }
   0xd   : > { %p218_p10 = pnand %p620_p6, %p217_p9 }
   0xe   : > { %v305_v0 = vld [vmem:[%s943_s1] sm:$0xff] (!%p218_p10)  ;;  %p267_p11 = scmp.lt.s32.totalorder (!%p218_p10), %s775_s15, 1  ;;  %v306_v1 = vld [vmem:[%s943_s1 + $0x8] sm:$0x7f] (!%p218_p10)  ;;  %vm358_vm0 = vcmask (!%p218_p10), 1046528   ;;  %v785_v2 = vmov (!%p218_p10), 0.0  }
   0xf   : > { %221 = sbr.rel (%p218_p10) target bundleno = 381 (0x17d), region = 32  ;;  %319 = vxpose.xlu0.b32.start [1/2] (short) (narrow) (!%p218_p10), %v305_v0, 16  ;;  %429 = vmatprep.mubr.f32.mxu0 (!%p218_p10), %v785_v2  ;;  %vm786_vm1 = vmmov (!%p218_p10), 1   ;;  %v787_v8 = vmov (!%p218_p10), 0   ;;  %v307_v9 = vld [vmem:[%s944_s2] sm:$0xff] (!%p218_p10)  ;;  %v308_v11 = vld [vmem:[%s944_s2 + $0x8] sm:$0xff] (!%p218_p10) }
  0x10   : > { %435 = vmatprep.mubr.f32.mxu1 (!%p218_p10), %v785_v2  ;;  %vm636_vm2 = vmpackc.low (!%p218_p10), %vm358_vm0, %vm786_vm1  ;;  %703 = vset.pattern.permute.xlu1 (!%p218_p10), %v787_v8  ;;  %vm351_vm3 = vcmask (!%p218_p10), 121856   ;;  %s263_s18 = sand.u32 (!%p218_p10), 1, %s767_s13   ;;  %s634_s26 = sshll.u32 (!%p218_p10), %s775_s15, 9 }
  0x11   : > { %311 = vperm.xlu1 (!%p218_p10), %703, %v307_v9   ;;  %s621_s19 = sshll.u32 (!%p218_p10), %s263_s18, 5  ;;  %s892_s29 = scalar_lea.hbm (!%p218_p10), %s945_s3, %s634_s26 }
  0x12   : > { %s265_s21 = scalar_lea.vmem (!%p218_p10), [#allocation2], %s621_s19 }
  0x13   : > { %320 = vxpose.xlu0.b32.end [2/2] (short) (narrow) (!%p218_p10), %v306_v1, 16  ;;  %s478_s23 = sshll.u32 (!%p218_p10), %s265_s21, 4  ;;  %s887_s23 = int_to_ptr.vmem [resolvable:$true] %s478_s23 }
  0x15   : > { %316 = vperm.xlu1 (!%p218_p10), %703, %v308_v11  }
  0x16   : > { %s268_s30 = scalar_select %p267_p11, %s775_s15, 1 }
  0x17   : > { %s896_s15 = scalar_lea.sflag [#allocation3], %s263_s18 }
  0x18   : > { %s633_s4 = sshll.u32 %s268_s30, 5  ;;  %s705_s30 = scalar_lea.vmem %s887_s23, 512 }
  0x19   : > { %s278_s7 = scalar_lea.vmem %s942_s0, %s633_s4  ;;  %p706_p12 = scmp.ne.s32.totalorder %s887_s23, %s705_s30 }
  0x1a   : > { %v302_v3 = vld [vmem:[%s278_s7 + $0x8] sm:$0xff]  ;;  %v304_v4 = vld [vmem:[%s278_s7 + $0x18] sm:$0x7f]  ;;  %v301_v5 = vld [vmem:[%s278_s7] sm:$0xff]  ;;  %s788_s4 = smov [#allocation2]  }
  0x1b   : > { %v635_v6 = vpack.c.bf16 %v304_v4, %v302_v3  ;;  %v303_v7 = vld [vmem:[%s278_s7 + $0x10] sm:$0x7f]  ;;  %p707_p13 = pnand %p706_p12, %p851_p4  ;;  %s709_s5 = sshll.u32 %s788_s4, 4  ;;  %s710_s5 = int_to_ptr.vmem [resolvable:$false] %s709_s5 }
  0x1c   : > { %v638_v10 = vpack.c.bf16 %v303_v7, %v301_v5  ;;  %s711_s6 = scalar_lea.vmem %s710_s5, 1024  ;;  %p712_p1 = scmp.lt.s32.totalorder %s887_s23, %s710_s5 }
  0x1d   : > { %637 = vmatprep.subr.msk.bf16.mxu0 %vm636_vm2, %v635_v6  ;;  %641 = vmatprep.subr.msk.bf16.mxu1 %vm636_vm2, %v635_v6  ;;  %p708_p0 = pneg %p707_p13  ;;  %p713_p2 = scmp.lt.s32.totalorder %s711_s6, %s705_s30 }
  0x1e   : > { %640 = vmatpush1.bf16.msk.msra.mxu0 %vm636_vm2, %v638_v10  ;;  %642 = vmatpush1.bf16.msk.msra.mxu1 %vm636_vm2, %v638_v10 }
  0x1f   : > { %p714_p3 = por %p713_p2, %p712_p1 }
  0x21   : > { %p715_p5 = pnand %p714_p3, %p708_p0 }
  0x3c   : > { %704 = vset.pattern.permute.xlu0 %v787_v8 }
  0x8f   : > { %v335_v12 = vpop.trf.xlu0 }
  0x90   : > { %626 = vmatmul.mubr.msk.f32.vlgmr.msra.gmra.mrb[0].mxu0 %vm351_vm3, %v335_v12  ;;  %v312_v14 = vpop.permute.xlu1 %311 }
  0x93   : > { %v336_v13 = vpop.trf.xlu0 }
  0x94   : > { %627 = vmatmul.mubr.msk.f32.vlgmr.msra.gmra.mrb[0].mxu1 %vm351_vm3, %v336_v13  ;;  %v317_v20 = vpop.permute.xlu1 %316 }
 0x163   : > { %v431_v15 = vpop.f32.mrb[0].mxu0 }
 0x164   : > { %v432_v16 = vadd.f32 %v431_v15, %v312_v14  ;;  %v433_v17 = vpop.f32.mrb[1].mxu0 }
 0x165   : > { %v434_v18 = vadd.f32 %v433_v17, %v312_v14 }
 0x166   : > { %vm442_vm4 = vcmp.ge.f32.partialorder %v432_v16, 0.0  ;;  %v446_v19 = vmul.f32 0.1, %v432_v16 }
 0x167   : > { %vm443_vm5 = vcmp.ge.f32.partialorder %v434_v18, 0.0  ;;  %v447_v21 = vmul.f32 0.1, %v434_v18  ;;  %v437_v22 = vpop.f32.mrb[0].mxu1 }
 0x168   : > { %v450_v23 = vsel %vm442_vm4, %v432_v16, %v446_v19  ;;  %v438_v24 = vadd.f32 %v437_v22, %v317_v20  ;;  %v439_v25 = vpop.f32.mrb[1].mxu1 }
 0x169   : > { %454 = vst [vmem:[%s265_s21] sm:$0xff] %v450_v23  ;;  %v451_v26 = vsel %vm443_vm5, %v434_v18, %v447_v21  ;;  %v440_v27 = vadd.f32 %v439_v25, %v317_v20 }
 0x16a   : > { %455 = vst [vmem:[%s265_s21 + $0x8] sm:$0xff] %v451_v26  ;;  %vm444_vm6 = vcmp.ge.f32.partialorder %v438_v24, 0.0  ;;  %v448_v28 = vmul.f32 0.1, %v438_v24 }
 0x16b   : > { %vm445_vm7 = vcmp.ge.f32.partialorder %v440_v27, 0.0  ;;  %v449_v29 = vmul.f32 0.1, %v440_v27 }
 0x16c   : > { %v452_v30 = vsel %vm444_vm6, %v438_v24, %v448_v28 }
 0x16d   : > { %456 = vst [vmem:[%s265_s21 + $0x10] sm:$0xff] %v452_v30  ;;  %v453_v31 = vsel %vm445_vm7, %v440_v27, %v449_v29 }
 0x16e   : > { %457 = vst [vmem:[%s265_s21 + $0x18] sm:$0xff] %v453_v31 }
 0x16f   : > { %718 = shalt.err (!%p715_p5)
}
 0x170   : > { %s719_s7 = scalar_lea.hbm %s892_s29, 512  ;;  %s723_s10 = scalar_lea.hbm %s945_s3, 1024 }
 0x171   : > { %p720_p6 = scmp.ne.s32.totalorder %s892_s29, %s719_s7  ;;  %p724_p10 = scmp.lt.u32.totalorder %s892_s29, %s945_s3 }
 0x172   : > { %p725_p11 = scmp.lt.u32.totalorder %s723_s10, %s719_s7  ;;  %p727_p13 = scmp.lt.u32.totalorder %s719_s7, %s892_s29 }
 0x173   : > { %p721_p7 = pnand %p720_p6, %p851_p4 }
 0x174   : > { %p726_p12 = por %p725_p11, %p724_p10 }
 0x175   : > { %p722_p9 = pneg %p721_p7 }
 0x176   : > { %p728_p0 = por %p727_p13, %p726_p12 }
 0x178   : > { %p729_p1 = pnand %p728_p0, %p722_p9 }
 0x17a   : > { %732 = shalt.err (!%p729_p1)
}
 0x17b   : > { %s789_s19 = smov 256   ;;  %s790_s21 = smov 16  }
 0x17c   : > { %643 = dma.vmem_to_hbm [thread:$0]  (%p851_p4), %s887_s23, 512, %s892_s29, %s896_s15, %s789_s19, %s789_s19, %s790_s21  }
 0x17d PF: > { %p649_p2 = scmp.ge.s32.totalorder %s783_s17, 2  ;;  %s493_s26 = sand.u32 1, %s763_s12  }
 0x17e   : > { %s494_s27 = scalar_lea.sflag [#allocation3], %s493_s26 }
 0x17f   : > { %p646_p3 = pnand %p649_p2, %p858_p8 }
 0x181   : > { %758 = dma.done.wait (!%p646_p3), %s494_s27, 512  }
 0x182   : > { %760 = vsyncadd (!%p646_p3), %s494_s27, 4294966784  ;;  %s16_s17 = sadd.s32 1, %s783_s17   ;;  %s948_s12 = smov %s767_s13 }
 0x183   : > { %p13_p5 = scmp.ge.s32.totalorder %s16_s17, 4   ;;  %s949_s13 = smov %s771_s14 }
 0x184   : > { %s950_s14 = smov %s864_s25  ;;  %s951_s15 = smov %s779_s16 }
 0x185   : > { %s952_s16 = smov %s954_s20  ;;  %15 = sbr.rel (!%p13_p5) target bundleno = 4 (0x4), region = 73 }
 0x18c   :  { %499 = vsyncpa [#allocation3], 1 }
 0x18d   :  { %501 = vsyncpa [#allocation3 + $0x1], 1 }

</bundles_post_ra>
